<compile_context>
chip_gen: v6e
topology: v6e:2x2x1
jax: 0.10.0
libtpu: 0.0.40
codegen_flags: <defaults>
</compile_context>

<pallas_src>
import functools

import jax
import jax.numpy as jnp
from jax.experimental import pallas as pl
from jax.experimental.pallas import tpu as pltpu


def _round_up(x, m):
    return ((x + m - 1) // m) * m


def _pad2(a, rows, cols):
    r, c = a.shape
    return jnp.pad(a, ((0, rows - r), (0, cols - c)))


# ---------------------------------------------------------------------------
# Kernel: fused 3-layer MLP on one batch tile.
# ---------------------------------------------------------------------------
def _mlp_kernel(x_ref, w1_ref, b1_ref, w2_ref, b2_ref, w3_ref, b3_ref, o_ref):
    x = x_ref[...]                                                   # (bt, 128) bf16
    # fc1 + ReLU  (f32 accumulation on MXU, bias/ReLU in f32, recast for next MXU op)
    h1 = jnp.dot(x, w1_ref[...], preferred_element_type=jnp.float32) + b1_ref[...]
    h1 = jnp.maximum(h1, 0.0).astype(jnp.bfloat16)                   # (bt, 128)
    # fc2 + ReLU
    h2 = jnp.dot(h1, w2_ref[...], preferred_element_type=jnp.float32) + b2_ref[...]
    h2 = jnp.maximum(h2, 0.0).astype(jnp.bfloat16)                   # (bt, 128)
    # fc3 (logits) -> lane-dense 128-wide output block, unmasked vst
    o_ref[...] = (jnp.dot(h2, w3_ref[...], preferred_element_type=jnp.float32)
                  + b3_ref[...]).astype(o_ref.dtype)                 # (bt, 128)


# ---------------------------------------------------------------------------
# One-time parameter preparation: transpose-free padded, bf16 weights / f32 biases.
# params: w1 (in,128), b1 (1,128), w2 (128,64), b2 (1,64), w3 (64,nc), b3 (1,nc)
# (weights already stored as (fan_in, fan_out) so the kernel computes x @ W + b,
#  matching PyTorch's x @ W.T + b).
# ---------------------------------------------------------------------------
def prepare_padded_params(params):
    w1, b1 = params["w1"], params["b1"]
    w2, b2 = params["w2"], params["b2"]
    w3, b3 = params["w3"], params["b3"]

    in_dim = w1.shape[0]
    h1_dim = w1.shape[1]            # 128
    h2_dim = w2.shape[1]            # 64
    num_classes = w3.shape[1]       # e.g. 10

    in_pad = _round_up(in_dim, 128)
    h2_pad = _round_up(h2_dim, 128)
    nc_pad = _round_up(num_classes, 128)

    padded = {
        "w1": _pad2(w1, in_pad, h1_dim).astype(jnp.bfloat16),
        "b1": b1.astype(jnp.float32),                       # (1, 128)
        "w2": _pad2(w2, h1_dim, h2_pad).astype(jnp.bfloat16),
        "b2": _pad2(b2, 1, h2_pad).astype(jnp.float32),
        "w3": _pad2(w3, h2_pad, nc_pad).astype(jnp.bfloat16),
        "b3": _pad2(b3, 1, nc_pad).astype(jnp.float32),
    }
    dims = {"in_dim": in_dim, "in_pad": in_pad, "nc": num_classes, "nc_pad": nc_pad}
    return padded, dims


# ---------------------------------------------------------------------------
# Forward pass (jitted; batch tile & dims are static).
# ---------------------------------------------------------------------------
@functools.partial(jax.jit, static_argnames=("in_pad", "nc", "nc_pad", "batch_tile"))
def _forward_padded(x, padded, *, in_pad, nc, nc_pad, batch_tile):
    B = x.shape[0]
    B_pad = _round_up(B, batch_tile)
    grid = (B_pad // batch_tile,)

    x_p = _pad2(x, B_pad, in_pad).astype(jnp.bfloat16)

    def full_spec(shape):
        return pl.BlockSpec(shape, lambda i: (0,) * len(shape))

    out_padded = pl.pallas_call(
        _mlp_kernel,
        out_shape=jax.ShapeDtypeStruct((B_pad, nc_pad), jnp.float32),
        grid_spec=pltpu.PrefetchScalarGridSpec(
            num_scalar_prefetch=0,
            grid=grid,
            in_specs=[
                pl.BlockSpec((batch_tile, in_pad), lambda i: (i, 0)),   # x tile
                full_spec(padded["w1"].shape), full_spec(padded["b1"].shape),
                full_spec(padded["w2"].shape), full_spec(padded["b2"].shape),
                full_spec(padded["w3"].shape), full_spec(padded["b3"].shape),
            ],
            out_specs=pl.BlockSpec((batch_tile, nc_pad), lambda i: (i, 0)),
        ),
        compiler_params=pltpu.CompilerParams(
            dimension_semantics=("parallel",)),
    )(x_p, padded["w1"], padded["b1"], padded["w2"], padded["b2"],
      padded["w3"], padded["b3"])

    # Strip batch & class padding (fused into the same jit).
    return out_padded[:B, :nc]


def hand_sign_model_forward(x, params, *, batch_tile=None):
    """HandSignModel forward: x (B, input_size) f32 -> (B, num_classes) f32 logits."""
    padded, dims = prepare_padded_params(params)
    B = x.shape[0]
    if batch_tile is None:
        batch_tile = 256 if B > 256 else max(8, _round_up(B, 8))
    batch_tile = max(8, _round_up(batch_tile, 8))
    return _forward_padded(x, padded,
                           in_pad=dims["in_pad"], nc=dims["nc"],
                           nc_pad=dims["nc_pad"], batch_tile=batch_tile)


# ---------------------------------------------------------------------------
# Init + pure-JAX reference (PyTorch nn.Linear default init semantics).
# ---------------------------------------------------------------------------
def init_params(key, input_size, num_classes):
    def linear(key, fan_in, fan_out):
        kw, kb = jax.random.split(key)
        bound = 1.0 / jnp.sqrt(fan_in)
        w = jax.random.uniform(kw, (fan_in, fan_out), jnp.float32, -bound, bound)
        b = jax.random.uniform(kb, (1, fan_out), jnp.float32, -bound, bound)
        return w, b

    k1, k2, k3 = jax.random.split(key, 3)
    w1, b1 = linear(k1, input_size, 128)
    w2, b2 = linear(k2, 128, 64)
    w3, b3 = linear(k3, 64, num_classes)
    return {"w1": w1, "b1": b1, "w2": w2, "b2": b2, "w3": w3, "b3": b3}


def reference_forward(x, p):
    h1 = jnp.maximum(x @ p["w1"] + p["b1"], 0.0)
    h2 = jnp.maximum(h1 @ p["w2"] + p["b2"], 0.0)
    return h2 @ p["w3"] + p["b3"]


if __name__ == "__main__":
    # 21 hand landmarks x 3 coords = 63 features, 10 sign classes.
    input_size = 63
    num_classes = 10
    batch = 12  # deliberately not a multiple of 8 to exercise the padding path

    key = jax.random.PRNGKey(0)
    kx, kp = jax.random.split(key)
    x = jax.random.normal(kx, (batch, input_size), jnp.float32)
    params = init_params(kp, input_size, num_classes)

    out = hand_sign_model_forward(x, params)
    out = jax.block_until_ready(out)

    ref = reference_forward(x, params)
    assert out.shape == (batch, num_classes), out.shape
    # Inputs/weights traverse the MXU in bf16 (f32 accumulation), so compare to
    # the f32 reference with a bf16-appropriate tolerance.
    assert jnp.allclose(out, ref, atol=3e-2, rtol=3e-2), "mismatch vs pure-JAX reference"

    print("KERNEL_OK")
</pallas_src>

<mosaic_0001>
module attributes {stable_mosaic.version = 11 : i64} {
  func.func @_mlp_kernel(%arg0: i32, %arg1: memref<16x128xbf16, #tpu.memory_space<vmem>>, %arg2: memref<128x128xbf16, #tpu.memory_space<vmem>>, %arg3: memref<1x128xf32, #tpu.memory_space<vmem>>, %arg4: memref<128x128xbf16, #tpu.memory_space<vmem>>, %arg5: memref<1x128xf32, #tpu.memory_space<vmem>>, %arg6: memref<128x128xbf16, #tpu.memory_space<vmem>>, %arg7: memref<1x128xf32, #tpu.memory_space<vmem>>, %arg8: memref<16x128xf32, #tpu.memory_space<vmem>>) attributes {dimension_semantics = [#tpu.dimension_semantics<parallel>], iteration_bounds = array<i64: 1>, scalar_prefetch = 0 : i64, scratch_operands = 0 : i64, tpu.core_type = #tpu.core_type<tc>, window_params = [{transform_indices = @transform_0, window_bounds = array<i64: 16, 128>}, {pipeline_mode = #tpu.pipeline_mode<synchronous>, transform_indices = @transform_1, window_bounds = array<i64: 128, 128>}, {pipeline_mode = #tpu.pipeline_mode<synchronous>, transform_indices = @transform_2, window_bounds = array<i64: 1, 128>}, {pipeline_mode = #tpu.pipeline_mode<synchronous>, transform_indices = @transform_3, window_bounds = array<i64: 128, 128>}, {pipeline_mode = #tpu.pipeline_mode<synchronous>, transform_indices = @transform_4, window_bounds = array<i64: 1, 128>}, {pipeline_mode = #tpu.pipeline_mode<synchronous>, transform_indices = @transform_5, window_bounds = array<i64: 128, 128>}, {pipeline_mode = #tpu.pipeline_mode<synchronous>, transform_indices = @transform_6, window_bounds = array<i64: 1, 128>}, {transform_indices = @transform_7, window_bounds = array<i64: 16, 128>}]} {
    %c0 = arith.constant 0 : index
    %c0_0 = arith.constant 0 : index
    %0 = vector.load %arg1[%c0, %c0_0] : memref<16x128xbf16, #tpu.memory_space<vmem>>, vector<16x128xbf16>
    %c0_1 = arith.constant 0 : index
    %c0_2 = arith.constant 0 : index
    %1 = vector.load %arg2[%c0_1, %c0_2] : memref<128x128xbf16, #tpu.memory_space<vmem>>, vector<128x128xbf16>
    %cst = arith.constant dense<0.000000e+00> : vector<16x128xf32>
    %2 = tpu.matmul %0, %1, %cst {dimension_numbers = #tpu.dot_dimension_numbers<[1], [0], [0], [1], [0, 0, 1, 1], [], []>} : vector<16x128xbf16>, vector<128x128xbf16>, vector<16x128xf32> -> vector<16x128xf32>
    %c0_3 = arith.constant 0 : index
    %c0_4 = arith.constant 0 : index
    %3 = vector.load %arg3[%c0_3, %c0_4] : memref<1x128xf32, #tpu.memory_space<vmem>>, vector<1x128xf32>
    %4 = vector.broadcast %3 : vector<1x128xf32> to vector<16x128xf32>
    %5 = arith.addf %2, %4 : vector<16x128xf32>
    %cst_5 = arith.constant 0.000000e+00 : f32
    %6 = vector.broadcast %cst_5 : f32 to vector<16x128xf32>
    %7 = arith.maximumf %5, %6 : vector<16x128xf32>
    %8 = arith.truncf %7 : vector<16x128xf32> to vector<16x128xbf16>
    %c0_6 = arith.constant 0 : index
    %c0_7 = arith.constant 0 : index
    %9 = vector.load %arg4[%c0_6, %c0_7] : memref<128x128xbf16, #tpu.memory_space<vmem>>, vector<128x128xbf16>
    %cst_8 = arith.constant dense<0.000000e+00> : vector<16x128xf32>
    %10 = tpu.matmul %8, %9, %cst_8 {dimension_numbers = #tpu.dot_dimension_numbers<[1], [0], [0], [1], [0, 0, 1, 1], [], []>} : vector<16x128xbf16>, vector<128x128xbf16>, vector<16x128xf32> -> vector<16x128xf32>
    %c0_9 = arith.constant 0 : index
    %c0_10 = arith.constant 0 : index
    %11 = vector.load %arg5[%c0_9, %c0_10] : memref<1x128xf32, #tpu.memory_space<vmem>>, vector<1x128xf32>
    %12 = vector.broadcast %11 : vector<1x128xf32> to vector<16x128xf32>
    %13 = arith.addf %10, %12 : vector<16x128xf32>
    %cst_11 = arith.constant 0.000000e+00 : f32
    %14 = vector.broadcast %cst_11 : f32 to vector<16x128xf32>
    %15 = arith.maximumf %13, %14 : vector<16x128xf32>
    %16 = arith.truncf %15 : vector<16x128xf32> to vector<16x128xbf16>
    %c0_12 = arith.constant 0 : index
    %c0_13 = arith.constant 0 : index
    %17 = vector.load %arg6[%c0_12, %c0_13] : memref<128x128xbf16, #tpu.memory_space<vmem>>, vector<128x128xbf16>
    %cst_14 = arith.constant dense<0.000000e+00> : vector<16x128xf32>
    %18 = tpu.matmul %16, %17, %cst_14 {dimension_numbers = #tpu.dot_dimension_numbers<[1], [0], [0], [1], [0, 0, 1, 1], [], []>} : vector<16x128xbf16>, vector<128x128xbf16>, vector<16x128xf32> -> vector<16x128xf32>
    %c0_15 = arith.constant 0 : index
    %c0_16 = arith.constant 0 : index
    %19 = vector.load %arg7[%c0_15, %c0_16] : memref<1x128xf32, #tpu.memory_space<vmem>>, vector<1x128xf32>
    %20 = vector.broadcast %19 : vector<1x128xf32> to vector<16x128xf32>
    %21 = arith.addf %18, %20 : vector<16x128xf32>
    %c0_17 = arith.constant 0 : index
    %c0_18 = arith.constant 0 : index
    %22 = vector.load %arg8[%c0_17, %c0_18] : memref<16x128xf32, #tpu.memory_space<vmem>>, vector<16x128xf32>
    tpu.vector_store %arg8[%c0_17, %c0_18], %21 {strides = array<i32>} : memref<16x128xf32, #tpu.memory_space<vmem>>, vector<16x128xf32>,
    return
  }
  func.func @transform_0(%arg0: i32) -> (i32, i32) {
    %c0_i32 = arith.constant 0 : i32
    %c0_i32_0 = arith.constant 0 : i32
    return %arg0, %c0_i32 : i32, i32
  }
  func.func @transform_1(%arg0: i32) -> (i32, i32) {
    %c0_i32 = arith.constant 0 : i32
    %c0_i32_0 = arith.constant 0 : i32
    %c0_i32_1 = arith.constant 0 : i32
    return %c0_i32, %c0_i32_0 : i32, i32
  }
  func.func @transform_2(%arg0: i32) -> (i32, i32) {
    %c0_i32 = arith.constant 0 : i32
    %c0_i32_0 = arith.constant 0 : i32
    %c0_i32_1 = arith.constant 0 : i32
    return %c0_i32, %c0_i32_0 : i32, i32
  }
  func.func @transform_3(%arg0: i32) -> (i32, i32) {
    %c0_i32 = arith.constant 0 : i32
    %c0_i32_0 = arith.constant 0 : i32
    %c0_i32_1 = arith.constant 0 : i32
    return %c0_i32, %c0_i32_0 : i32, i32
  }
  func.func @transform_4(%arg0: i32) -> (i32, i32) {
    %c0_i32 = arith.constant 0 : i32
    %c0_i32_0 = arith.constant 0 : i32
    %c0_i32_1 = arith.constant 0 : i32
    return %c0_i32, %c0_i32_0 : i32, i32
  }
  func.func @transform_5(%arg0: i32) -> (i32, i32) {
    %c0_i32 = arith.constant 0 : i32
    %c0_i32_0 = arith.constant 0 : i32
    %c0_i32_1 = arith.constant 0 : i32
    return %c0_i32, %c0_i32_0 : i32, i32
  }
  func.func @transform_6(%arg0: i32) -> (i32, i32) {
    %c0_i32 = arith.constant 0 : i32
    %c0_i32_0 = arith.constant 0 : i32
    %c0_i32_1 = arith.constant 0 : i32
    return %c0_i32, %c0_i32_0 : i32, i32
  }
  func.func @transform_7(%arg0: i32) -> (i32, i32) {
    %c0_i32 = arith.constant 0 : i32
    %c0_i32_0 = arith.constant 0 : i32
    return %arg0, %c0_i32 : i32, i32
  }
}

</mosaic_0001>

<bundles_post_ra>
// kernel: _forward_padded.1
= control target key start
LH: loop header
LB: loop body
LE: loop exit
PB: predicated region body
PF: predicated region fallthrough
CT: control target
= control target key end

     0   :  { %12 = vsyncpa [#allocation3], 0  ;;  %s779_s0 = inlined_call_operand.vmem [shape: bf16[16,128], index: 0, kind: input, shape index: {}]   ;;  %s780_s1 = inlined_call_operand.hbm [shape: bf16[128,128], index: 1, kind: input, shape index: {}]   ;;  %s781_s2 = inlined_call_operand.vmem [shape: f32[1,128], index: 2, kind: input, shape index: {}]   ;;  %s782_s3 = inlined_call_operand.hbm [shape: bf16[128,128], index: 3, kind: input, shape index: {}]   ;;  %s783_s4 = inlined_call_operand.vmem [shape: f32[1,128], index: 4, kind: input, shape index: {}]   ;;  %s784_s5 = inlined_call_operand.hbm [shape: bf16[128,128], index: 5, kind: input, shape index: {}]   ;;  %s785_s6 = inlined_call_operand.vmem [shape: f32[1,128], index: 6, kind: input, shape index: {}]   ;;  %s786_s7 = inlined_call_operand.hbm [shape: f32[16,128], index: 7, kind: output, shape index: {}]  }
   0x1   :  { %13 = vsyncpa [#allocation6], 0 }
   0x2   :  { %14 = vsyncpa [#allocation4], 0  ;;  %s675_s24 = smov [#allocation5]   ;;  %s676_s26 = smov [#allocation2]  }
   0x3   :  { %s36_s25 = sshll.u32 %s675_s24, 4  ;;  %s22_s27 = sshll.u32 %s676_s26, 4  ;;  %s37_s25 = int_to_ptr.vmem [resolvable:$true] %s36_s25  ;;  %s23_s27 = int_to_ptr.vmem [resolvable:$true] %s22_s27 }
   0x4   :  { %s597_s28 = scalar_lea.vmem %s37_s25, 1024  ;;  %p602_p1 = scmp.lt.s32.totalorder %s37_s25, %s37_s25 }
   0x5   :  { %p598_p0 = scmp.ne.s32.totalorder %s37_s25, %s597_s28  ;;  %p603_p2 = scmp.lt.s32.totalorder %s597_s28, %s597_s28 }
   0x7   :  { %p604_p3 = por %p603_p2, %p602_p1 }
   0x9   :  { %p605_p4 = pnand %p604_p3, %p598_p0 }
   0xb   :  { %608 = shalt.err (!%p605_p4)
}
   0xc   :  { %s677_s29 = smov 64   ;;  %s678_s30 = smov 4  }
   0xd   :  { %42 = dma.hbm_to_vmem [thread:$0]  %s782_s3, 1024, %s37_s25, [#allocation6], %s677_s29, %s677_s29, %s678_s30  }
   0xe   :  { %s617_s10 = scalar_lea.vmem %s23_s27, 1024  ;;  %p622_p6 = scmp.lt.s32.totalorder %s23_s27, %s23_s27 }
   0xf   :  { %p618_p5 = scmp.ne.s32.totalorder %s23_s27, %s617_s10  ;;  %p623_p7 = scmp.lt.s32.totalorder %s617_s10, %s617_s10 }
  0x11   :  { %p624_p8 = por %p623_p7, %p622_p6 }
  0x13   :  { %p625_p9 = pnand %p624_p8, %p618_p5 }
  0x15   :  { %628 = shalt.err (!%p625_p9)
}
  0x16   :  { %28 = dma.hbm_to_vmem [thread:$0]  %s780_s1, 1024, %s23_s27, [#allocation3], %s677_s29, %s677_s29, %s678_s30  }
  0x17   :  { %s679_s13 = smov [#allocation7]  }
  0x18   :  { %s50_s14 = sshll.u32 %s679_s13, 4  ;;  %s51_s14 = int_to_ptr.vmem [resolvable:$true] %s50_s14 }
  0x19   :  { %s637_s15 = scalar_lea.vmem %s51_s14, 1024  ;;  %p642_p11 = scmp.lt.s32.totalorder %s51_s14, %s51_s14 }
  0x1a   :  { %p638_p10 = scmp.ne.s32.totalorder %s51_s14, %s637_s15  ;;  %p643_p12 = scmp.lt.s32.totalorder %s637_s15, %s637_s15 }
  0x1c   :  { %p644_p13 = por %p643_p12, %p642_p11 }
  0x1e   :  { %p645_p0 = pnand %p644_p13, %p638_p10 }
  0x20   :  { %648 = shalt.err (!%p645_p0)
}
  0x21   :  { %56 = dma.hbm_to_vmem [thread:$0]  %s784_s5, 1024, %s51_s14, [#allocation6], %s677_s29, %s677_s29, %s678_s30  }
  0x22   :  { %669 = dma.done.wait [#allocation3], 1024  }
  0x23   :  { %670 = vsyncadd [#allocation3], 4294966272 }
  0x24   :  { %671 = dma.done.wait [#allocation6], 2048  }
  0x25   :  { %672 = vsyncadd [#allocation6], 4294965248  ;;  %v680_v0 = vmov 0.0   ;;  %vm681_vm0 = vmmov 0   ;;  %v564_v1 = vld [vmem:[#allocation2 + $0x38] sm:$0xff]   ;;  %v565_v2 = vld [vmem:[#allocation2 + $0x30] sm:$0xff]  }
  0x26   :  { %494 = vmatprep.subr.bf16.mxu0 %v680_v0  ;;  %510 = vmatprep.mubr.msk.bf16.mxu0 %vm681_vm0, %v680_v0  ;;  %v566_v3 = vld [vmem:[#allocation2 + $0x28] sm:$0xff]   ;;  %v573_v4 = vld [vmem:[#allocation5 + $0x38] sm:$0xff]   ;;  %v567_v5 = vld [vmem:[#allocation2 + $0x20] sm:$0xff]   ;;  %s682_s21 = smov [#allocation8]  }
  0x27   :  { %514 = vmatprep.subr.bf16.mxu1 %v680_v0  ;;  %530 = vmatprep.mubr.msk.bf16.mxu1 %vm681_vm0, %v680_v0  ;;  %v574_v6 = vld [vmem:[#allocation5 + $0x30] sm:$0xff]   ;;  %v568_v7 = vld [vmem:[#allocation2 + $0x18] sm:$0xff]   ;;  %v575_v8 = vld [vmem:[#allocation5 + $0x28] sm:$0xff]   ;;  %s426_s22 = sshll.u32 %s682_s21, 4  ;;  %s427_s22 = int_to_ptr.vmem [resolvable:$true] %s426_s22 }
  0x28   :  { %495 = vmatpush3.bf16.msra.mxu0 %v564_v1  ;;  %515 = vmatpush3.bf16.msra.mxu1 %v573_v4  ;;  %v569_v9 = vld [vmem:[#allocation2 + $0x10] sm:$0xff]   ;;  %v576_v10 = vld [vmem:[#allocation5 + $0x20] sm:$0xff]   ;;  %v570_v11 = vld [vmem:[#allocation2 + $0x8] sm:$0xff]   ;;  %p654_p2 = scmp.lt.s32.totalorder %s427_s22, %s427_s22 }
  0x29   :  { %496 = vmatprep.subr.bf16.mxu0 %v680_v0  ;;  %516 = vmatprep.subr.bf16.mxu1 %v680_v0  ;;  %v577_v12 = vld [vmem:[#allocation5 + $0x18] sm:$0xff]   ;;  %v571_v13 = vld [vmem:[#allocation2] sm:$0xff]   ;;  %v578_v15 = vld [vmem:[#allocation5 + $0x10] sm:$0xff]  }
  0x2a   :  { %v572_v14 = vld [vmem:[%s779_s0] sm:$0xff]   ;;  %v579_v16 = vld [vmem:[#allocation5 + $0x8] sm:$0xff]   ;;  %v581_v18 = vld [vmem:[#allocation7 + $0x38] sm:$0xff]  }
  0x2b   :  { %v580_v17 = vld [vmem:[#allocation5] sm:$0xff]   ;;  %v582_v19 = vld [vmem:[#allocation7 + $0x30] sm:$0xff]   ;;  %v583_v20 = vld [vmem:[#allocation7 + $0x28] sm:$0xff]  }
  0x2c   :  { %497 = vmatpush3.bf16.msra.mxu0 %v565_v2  ;;  %517 = vmatpush3.bf16.msra.mxu1 %v574_v6  ;;  %v584_v21 = vld [vmem:[#allocation7 + $0x20] sm:$0xff]   ;;  %v585_v22 = vld [vmem:[#allocation7 + $0x18] sm:$0xff]   ;;  %v586_v33 = vld [vmem:[#allocation7 + $0x10] sm:$0xff]  }
  0x2d   :  { %498 = vmatprep.subr.bf16.mxu0 %v680_v0  ;;  %518 = vmatprep.subr.bf16.mxu1 %v680_v0  ;;  %v439_v23 = vld [vmem:[%s781_s2] ss:$0 sm:$0xff]  ;;  %v587_v34 = vld [vmem:[#allocation7 + $0x8] sm:$0xff]  }
  0x2e   :  { %v588_v35 = vld [vmem:[#allocation7] sm:$0xff]  }
  0x2f   :  { %v449_v36 = vld [vmem:[%s783_s4] ss:$0 sm:$0xff]  ;;  %s649_s4 = scalar_lea.vmem %s427_s22, 256 }
  0x30   :  { %499 = vmatpush3.bf16.msra.mxu0 %v566_v3  ;;  %519 = vmatpush3.bf16.msra.mxu1 %v575_v8  ;;  %v458_v46 = vld [vmem:[%s785_s6] ss:$0 sm:$0xff]  ;;  %p650_p1 = scmp.ne.s32.totalorder %s427_s22, %s649_s4  ;;  %p655_p3 = scmp.lt.s32.totalorder %s649_s4, %s649_s4 }
  0x31   :  { %500 = vmatprep.subr.bf16.mxu0 %v680_v0  ;;  %520 = vmatprep.subr.bf16.mxu1 %v680_v0 }
  0x32   :  { %p656_p4 = por %p655_p3, %p654_p2 }
  0x34   :  { %501 = vmatpush3.bf16.msra.mxu0 %v567_v5  ;;  %521 = vmatpush3.bf16.msra.mxu1 %v576_v10  ;;  %p657_p5 = pnand %p656_p4, %p650_p1 }
  0x35   :  { %502 = vmatprep.subr.bf16.mxu0 %v680_v0  ;;  %522 = vmatprep.subr.bf16.mxu1 %v680_v0 }
  0x38   :  { %503 = vmatpush3.bf16.msra.mxu0 %v568_v7  ;;  %523 = vmatpush3.bf16.msra.mxu1 %v577_v12 }
  0x39   :  { %504 = vmatprep.subr.bf16.mxu0 %v680_v0  ;;  %524 = vmatprep.subr.bf16.mxu1 %v680_v0 }
  0x3c   :  { %505 = vmatpush3.bf16.msra.mxu0 %v569_v9  ;;  %525 = vmatpush3.bf16.msra.mxu1 %v578_v15 }
  0x3d   :  { %506 = vmatprep.subr.bf16.mxu0 %v680_v0  ;;  %526 = vmatprep.subr.bf16.mxu1 %v680_v0 }
  0x40   :  { %507 = vmatpush3.bf16.msra.mxu0 %v570_v11  ;;  %527 = vmatpush3.bf16.msra.mxu1 %v579_v16 }
  0x41   :  { %508 = vmatprep.subr.bf16.mxu0 %v680_v0  ;;  %528 = vmatprep.subr.bf16.mxu1 %v680_v0 }
  0x44   :  { %509 = vmatpush3.bf16.msra.mxu0 %v571_v13  ;;  %529 = vmatpush3.bf16.msra.mxu1 %v580_v17 }
  0x45   :  { %534 = vmatprep.subr.bf16.mxu0 %v680_v0 }
  0x47   :  { %511 = vmatmul.mubr.bf16.vlgmr.msra.gmra.mxu0 %v572_v14 }
  0x48   :  { %550 = vmatprep.mubr.msk.bf16.mxu0 %vm681_vm0, %v680_v0  ;;  %535 = vmatpush3.bf16.msra.mxu0 %v581_v18 }
  0x49   :  { %536 = vmatprep.subr.bf16.mxu0 %v680_v0 }
  0x4c   :  { %537 = vmatpush3.bf16.msra.mxu0 %v582_v19 }
  0x4d   :  { %538 = vmatprep.subr.bf16.mxu0 %v680_v0 }
  0x50   :  { %539 = vmatpush3.bf16.msra.mxu0 %v583_v20 }
  0x51   :  { %540 = vmatprep.subr.bf16.mxu0 %v680_v0 }
  0x54   :  { %541 = vmatpush3.bf16.msra.mxu0 %v584_v21 }
  0x55   :  { %542 = vmatprep.subr.bf16.mxu0 %v680_v0 }
  0x58   :  { %543 = vmatpush3.bf16.msra.mxu0 %v585_v22 }
  0x59   :  { %544 = vmatprep.subr.bf16.mxu0 %v680_v0 }
  0x5c   :  { %545 = vmatpush3.bf16.msra.mxu0 %v586_v33 }
  0x5d   :  { %546 = vmatprep.subr.bf16.mxu0 %v680_v0 }
  0x60   :  { %547 = vmatpush3.bf16.msra.mxu0 %v587_v34 }
  0x61   :  { %548 = vmatprep.subr.bf16.mxu0 %v680_v0 }
  0x64   :  { %549 = vmatpush3.bf16.msra.mxu0 %v588_v35 }
 0x107   :  { %v182_v24 = vpop.f32.mrf.mxu0 }
 0x108   :  { %v183_v26 = vadd.f32 %v439_v23, %v182_v24 }
 0x109   :  { %v512_v25 = vpop.f32.mrf.mxu0 }
 0x10a   :  { %v189_v30 = vmax.f32 %v183_v26, 0.0 }
 0x10b   :  { %v185_v27 = vpop.f32.mrf.mxu0 }
 0x10c   :  { %v186_v28 = vadd.f32 %v439_v23, %v185_v27 }
 0x10d   :  { %v513_v29 = vpop.f32.mrf.mxu0 }
 0x10e   :  { %v190_v31 = vmax.f32 %v186_v28, 0.0 }
 0x110   :  { %v191_v32 = vpack.c.bf16 %v190_v31, %v189_v30 }
 0x112   :  { %531 = vmatmul.mubr.bf16.vlgmr.msra.gmra.mxu1 %v191_v32 }
 0x1d2   :  { %v297_v37 = vpop.f32.mrf.mxu1 }
 0x1d3   :  { %v298_v39 = vadd.f32 %v449_v36, %v297_v37 }
 0x1d4   :  { %v532_v38 = vpop.f32.mrf.mxu1 }
 0x1d5   :  { %v304_v43 = vmax.f32 %v298_v39, 0.0 }
 0x1d6   :  { %v300_v40 = vpop.f32.mrf.mxu1 }
 0x1d7   :  { %v301_v41 = vadd.f32 %v449_v36, %v300_v40 }
 0x1d8   :  { %v533_v42 = vpop.f32.mrf.mxu1 }
 0x1d9   :  { %v305_v44 = vmax.f32 %v301_v41, 0.0 }
 0x1db   :  { %v306_v45 = vpack.c.bf16 %v305_v44, %v304_v43 }
 0x1dd   :  { %551 = vmatmul.mubr.bf16.vlgmr.msra.gmra.mxu0 %v306_v45 }
 0x29d   :  { %v412_v47 = vpop.f32.mrf.mxu0 }
 0x29e   :  { %v413_v48 = vadd.f32 %v458_v46, %v412_v47 }
 0x29f   :  { %v552_v49 = vpop.f32.mrf.mxu0 }
 0x2a0   :  { %419 = vst [vmem:[#allocation8] sm:$0xff] %v413_v48 }
 0x2a1   :  { %v415_v50 = vpop.f32.mrf.mxu0 }
 0x2a2   :  { %v416_v51 = vadd.f32 %v458_v46, %v415_v50 }
 0x2a3   :  { %v553_v52 = vpop.f32.mrf.mxu0 }
 0x2a4   :  { %420 = vst [vmem:[#allocation8 + $0x8] sm:$0xff] %v416_v51 }
 0x2a5   :  { %660 = shalt.err (!%p657_p5)
}
 0x2a6   :  { %s683_s23 = smov 128   ;;  %s684_s6 = smov 8  }
 0x2a7   :  { %432 = dma.vmem_to_hbm [thread:$0]  %s427_s22, 256, %s786_s7, [#allocation4], %s683_s23, %s683_s23, %s684_s6  }
 0x2a8   :  { %673 = dma.done.wait [#allocation4], 256  }
 0x2a9   :  { %674 = vsyncadd [#allocation4], 4294967040 }
 0x2aa   :  { %436 = vsyncpa [#allocation3], 1 }
 0x2ab   :  { %437 = vsyncpa [#allocation6], 1 }
 0x2ac   :  { %438 = vsyncpa [#allocation4], 1 }

</bundles_post_ra>
